<compile_context>
chip_gen: v5e
topology: v5e:2x2
jax: 0.10.0
libtpu: 0.0.40
codegen_flags: <defaults>
</compile_context>

<pallas_src>
import jax
import jax.numpy as jnp
from jax.experimental import pallas as pl
from jax.experimental.pallas import tpu as pltpu


def softrmax_kernel(x_ref, o_ref):
    # x_ref: (TB, C) tile of the input batch; o_ref: (TB, C) output tile.
    x = x_ref[...].astype(jnp.float32)                     # (TB, C)

    # e is the identity:
    #   d[b, i] = (||x_b||^2 - x[b,i]^2) + (x[b,i] - 1)^2
    sq = jnp.sum(x * x, axis=-1, keepdims=True)            # (TB, 1)
    xm1 = x - 1.0                                           # (TB, C)
    d = (sq - x * x) + xm1 * xm1                            # (TB, C)

    # nu_i = 1/d_i + 1e-20 (eps added after the divide, matching PyTorch)
    nu = 1.0 / d + 1e-20                                    # (TB, C)
    denom = jnp.sum(nu, axis=-1, keepdims=True)             # (TB, 1)
    o_ref[...] = (nu / denom).astype(o_ref.dtype)


def softrmax(x, *, tb=None):
    """Pallas softRmax forward. x: (B, C). Returns (B, C)."""
    B, C = x.shape

    # Sublane alignment: 8 rows for 32-bit dtypes, 16 for sub-32-bit (bf16 etc.)
    mult = 8 if jnp.dtype(x.dtype).itemsize >= 4 else 16

    if tb is None:
        tb = min(B, 512)
    if B >= mult:
        tb = max(mult, (min(tb, B) // mult) * mult)
    else:
        tb = B  # tiny batch: single block equal to full array dims

    # Pad batch up to a multiple of the tile; padded rows are harmless
    # (x = 0 -> d = 1 per class -> uniform 1/C output) and sliced off below.
    n_blocks = pl.cdiv(B, tb)
    Bp = n_blocks * tb
    xp = x if Bp == B else jnp.pad(x, ((0, Bp - B), (0, 0)))

    itemsize = jnp.dtype(x.dtype).itemsize
    out = pl.pallas_call(
        softrmax_kernel,
        out_shape=jax.ShapeDtypeStruct((Bp, C), x.dtype),
        grid_spec=pltpu.PrefetchScalarGridSpec(
            num_scalar_prefetch=0,
            grid=(n_blocks,),
            in_specs=[pl.BlockSpec((tb, C), lambda i: (i, 0))],
            out_specs=pl.BlockSpec((tb, C), lambda i: (i, 0)),
        ),
        compiler_params=pltpu.CompilerParams(
            dimension_semantics=("parallel",),
        ),
        cost_estimate=pl.CostEstimate(
            flops=9 * Bp * C,
            transcendentals=0,
            bytes_accessed=2 * Bp * C * itemsize,
        ),
    )(xp)

    return out if Bp == B else out[:B]


def softrmax_ref(x, e):
    # Pure-JAX reference mirroring the PyTorch loop exactly.
    nus = []
    for i in range(e.shape[0]):
        nus.append(1.0 / jnp.sum((x - e[i]) ** 2, axis=1) + 1e-20)
    nus = jnp.stack(nus, axis=1)                # (B, C)
    return nus / jnp.sum(nus, axis=1, keepdims=True)


if __name__ == "__main__":
    num_classes = 10                            # CIFAR-10 head
    batch = 16

    key = jax.random.PRNGKey(0)
    x = jax.random.normal(key, (batch, num_classes), dtype=jnp.float32)
    e = jnp.eye(num_classes, dtype=jnp.float32)  # identity buffer (reference only)

    out = jax.block_until_ready(softrmax(x))
    ref = softrmax_ref(x, e)

    assert out.shape == (batch, num_classes)
    assert jnp.allclose(out, ref, atol=1e-5, rtol=1e-5), "mismatch vs reference"
    # rows should sum to ~1
    assert jnp.allclose(jnp.sum(out, axis=1), 1.0, atol=1e-5)

    print("KERNEL_OK")
</pallas_src>

<mosaic_0001>
module attributes {stable_mosaic.version = 11 : i64} {
  func.func @softrmax_kernel(%arg0: i32, %arg1: memref<16x10xf32, #tpu.memory_space<vmem>>, %arg2: memref<16x10xf32, #tpu.memory_space<vmem>>) attributes {dimension_semantics = [#tpu.dimension_semantics<parallel>], iteration_bounds = array<i64: 1>, scalar_prefetch = 0 : i64, scratch_operands = 0 : i64, tpu.core_type = #tpu.core_type<tc>, window_params = [{transform_indices = @transform_0, window_bounds = array<i64: 16, 10>}, {transform_indices = @transform_1, window_bounds = array<i64: 16, 10>}]} {
    %c0 = arith.constant 0 : index
    %c0_0 = arith.constant 0 : index
    %0 = vector.load %arg1[%c0, %c0_0] : memref<16x10xf32, #tpu.memory_space<vmem>>, vector<16x10xf32>
    %1 = arith.mulf %0, %0 : vector<16x10xf32>
    %cst = arith.constant dense<0.000000e+00> : vector<16xf32>
    %2 = vector.multi_reduction <add>, %1, %cst [1] : vector<16x10xf32> to vector<16xf32>
    %3 = vector.shape_cast %2 : vector<16xf32> to vector<16x1xf32>
    %cst_1 = arith.constant 1.000000e+00 : f32
    %4 = vector.broadcast %cst_1 : f32 to vector<16x10xf32>
    %5 = arith.subf %0, %4 : vector<16x10xf32>
    %6 = arith.mulf %0, %0 : vector<16x10xf32>
    %7 = vector.broadcast %3 : vector<16x1xf32> to vector<16x10xf32>
    %8 = arith.subf %7, %6 : vector<16x10xf32>
    %9 = arith.mulf %5, %5 : vector<16x10xf32>
    %10 = arith.addf %8, %9 : vector<16x10xf32>
    %cst_2 = arith.constant 1.000000e+00 : f32
    %11 = vector.broadcast %cst_2 : f32 to vector<16x10xf32>
    %12 = arith.divf %11, %10 : vector<16x10xf32>
    %cst_3 = arith.constant 9.99999968E-21 : f32
    %13 = vector.broadcast %cst_3 : f32 to vector<16x10xf32>
    %14 = arith.addf %12, %13 : vector<16x10xf32>
    %cst_4 = arith.constant dense<0.000000e+00> : vector<16xf32>
    %15 = vector.multi_reduction <add>, %14, %cst_4 [1] : vector<16x10xf32> to vector<16xf32>
    %16 = vector.shape_cast %15 : vector<16xf32> to vector<16x1xf32>
    %17 = vector.broadcast %16 : vector<16x1xf32> to vector<16x10xf32>
    %18 = arith.divf %14, %17 : vector<16x10xf32>
    %c0_5 = arith.constant 0 : index
    %c0_6 = arith.constant 0 : index
    %19 = vector.load %arg2[%c0_5, %c0_6] : memref<16x10xf32, #tpu.memory_space<vmem>>, vector<16x10xf32>
    tpu.vector_store %arg2[%c0_5, %c0_6], %18 {strides = array<i32>} : memref<16x10xf32, #tpu.memory_space<vmem>>, vector<16x10xf32>,
    return
  }
  func.func @transform_0(%arg0: i32) -> (i32, i32) {
    %c0_i32 = arith.constant 0 : i32
    %c0_i32_0 = arith.constant 0 : i32
    return %arg0, %c0_i32 : i32, i32
  }
  func.func @transform_1(%arg0: i32) -> (i32, i32) {
    %c0_i32 = arith.constant 0 : i32
    %c0_i32_0 = arith.constant 0 : i32
    return %arg0, %c0_i32 : i32, i32
  }
}

</mosaic_0001>

<bundles_post_ra>
// kernel: tpu_custom_call.1
= control target key start
LH: loop header
LB: loop body
LE: loop exit
PB: predicated region body
PF: predicated region fallthrough
CT: control target
= control target key end

     0   :  { %6 = vsyncpa [#allocation3], 0  ;;  %s231_s0 = inlined_call_operand.hbm [shape: f32[16,10], index: 0, kind: input, shape index: {}]   ;;  %s232_s1 = inlined_call_operand.hbm [shape: f32[16,10], index: 1, kind: output, shape index: {}]  }
   0x1   :  { %7 = vsyncpa [#allocation4], 0  ;;  %s12_s8 = sshll.u32 %s231_s0, 4  ;;  %s199_s9 = smov [#allocation2]   ;;  %s13_s8 = int_to_ptr.hbm [resolvable:$true] %s12_s8 }
   0x2   :  { %s14_s10 = sshll.u32 %s199_s9, 4  ;;  %s200_s11 = smov 128   ;;  %s15_s10 = int_to_ptr.vmem [resolvable:$true] %s14_s10 }
   0x3   :  { %s201_s12 = smov 8  }
   0x4   :  { %20 = dma.hbm_to_vmem [thread:$0]  %s13_s8, 256, %s15_s10, [#allocation3], %s200_s11, %s200_s11, %s201_s12  }
   0x5   :  { %195 = dma.done.wait [#allocation3], 256  }
   0x6   :  { %196 = vsyncadd [#allocation3], 4294967040  ;;  %v25_v0 = vld [vmem:[#allocation2] sm:$0xff]  ;;  %vm29_vm0 = vcmask 80896   ;;  %v26_v2 = vld [vmem:[#allocation2 + $0x8] sm:$0xff]  ;;  %s202_s0 = smov [#allocation5]  }
   0x7   :  { %v27_v1 = vmul.f32 %v25_v0, %v25_v0  ;;  %v28_v4 = vmul.f32 %v26_v2, %v26_v2  ;;  %v133_v6 = vadd.f32 -1.0, %v25_v0  ;;  %v134_v10 = vadd.f32 -1.0, %v26_v2  ;;  %s118_s13 = sshll.u32 %s202_s0, 4  ;;  %s120_s16 = sshll.u32 %s232_s1, 4  ;;  %s119_s13 = int_to_ptr.vmem [resolvable:$true] %s118_s13  ;;  %s121_s16 = int_to_ptr.hbm [resolvable:$true] %s120_s16 }
   0x9   :  { %v30_v3 = vsel %vm29_vm0, %v27_v1, 0.0  ;;  %v33_v5 = vsel %vm29_vm0, %v28_v4, 0.0  ;;  %v40_v7 = vmul.f32 %v133_v6, %v133_v6  ;;  %v41_v12 = vmul.f32 %v134_v10, %v134_v10 }
   0xa   :  { %31 = vadd.xlane.f32.xlu0 %v30_v3 }
  0x12   :  { %34 = vadd.xlane.f32.xlu0 %v33_v5 }
  0x7d   :  { %v32_v8 = vpop.xlane.xlu0 %31 }
  0x7e   :  { %v38_v9 = vsub.f32 %v32_v8, %v27_v1 }
  0x80   :  { %v42_v11 = vadd.f32 %v40_v7, %v38_v9 }
  0x82   :  { %139 = vrcp.f32 %v42_v11  ;;  %v55_v19 = vand.u32 2147483648, %v42_v11  ;;  %v53_v21 = vand.u32 2147483647, %v42_v11  ;;  %vm49_vm2 = vweird.f32 %v42_v11 }
  0x84   :  { %v56_v24 = vor.u32 1.1754944e-38, %v55_v19  ;;  %vm54_vm4 = vcmp.eq.f32.partialorder %v53_v21, 8.507059e+37 }
  0x85   :  { %v35_v13 = vpop.xlane.xlu0 %34 }
  0x86   :  { %v39_v14 = vsub.f32 %v35_v13, %v28_v4 }
  0x88   :  { %v140_v15 = vpop.eup %139  ;;  %v43_v16 = vadd.f32 %v41_v12, %v39_v14 }
  0x89   :  { %v45_v17 = vmul.f32 %v140_v15, %v42_v11  ;;  %vm50_vm1 = vweird.f32 %v140_v15 }
  0x8a   :  { %141 = vrcp.f32 %v43_v16  ;;  %vm51_vm3 = vmor %vm49_vm2, %vm50_vm1  ;;  %v70_v30 = vand.u32 2147483648, %v43_v16  ;;  %v68_v33 = vand.u32 2147483647, %v43_v16  ;;  %vm64_vm6 = vweird.f32 %v43_v16 }
  0x8b   :  { %v46_v18 = vsub.f32 1.0, %v45_v17 }
  0x8c   :  { %v71_v35 = vor.u32 1.1754944e-38, %v70_v30  ;;  %vm69_vm8 = vcmp.eq.f32.partialorder %v68_v33, 8.507059e+37 }
  0x8d   :  { %v47_v20 = vmul.f32 %v140_v15, %v46_v18 }
  0x8f   :  { %v48_v22 = vadd.f32 %v140_v15, %v47_v20 }
  0x90   :  { %v142_v23 = vpop.eup %141 }
  0x91   :  { %v52_v25 = vsel %vm51_vm3, %v140_v15, %v48_v22  ;;  %v60_v26 = vmul.f32 %v142_v23, %v43_v16  ;;  %vm65_vm5 = vweird.f32 %v142_v23 }
  0x92   :  { %v57_v27 = vsel %vm54_vm4, %v56_v24, %v52_v25  ;;  %vm66_vm7 = vmor %vm64_vm6, %vm65_vm5 }
  0x93   :  { %v74_v28 = vadd.f32 1e-20, %v57_v27  ;;  %v61_v29 = vsub.f32 1.0, %v60_v26 }
  0x95   :  { %v76_v31 = vsel %vm29_vm0, %v74_v28, 0.0  ;;  %v62_v32 = vmul.f32 %v142_v23, %v61_v29 }
  0x96   :  { %77 = vadd.xlane.f32.xlu1 %v76_v31 }
  0x97   :  { %v63_v34 = vadd.f32 %v142_v23, %v62_v32 }
  0x99   :  { %v67_v36 = vsel %vm66_vm7, %v142_v23, %v63_v34 }
  0x9a   :  { %v72_v37 = vsel %vm69_vm8, %v71_v35, %v67_v36 }
  0x9b   :  { %v75_v38 = vadd.f32 1e-20, %v72_v37 }
  0x9d   :  { %v79_v39 = vsel %vm29_vm0, %v75_v38, 0.0 }
  0x9e   :  { %80 = vadd.xlane.f32.xlu1 %v79_v39 }
 0x109   :  { %v78_v40 = vpop.xlane.xlu1 %77 }
 0x10a   :  { %143 = vrcp.f32 %v78_v40  ;;  %v93_v45 = vand.u32 2147483648, %v78_v40  ;;  %v91_v47 = vand.u32 2147483647, %v78_v40  ;;  %vm87_vm10 = vweird.f32 %v78_v40 }
 0x10c   :  { %v94_v50 = vor.u32 1.1754944e-38, %v93_v45  ;;  %vm92_vm12 = vcmp.eq.f32.partialorder %v91_v47, 8.507059e+37 }
 0x110   :  { %v144_v41 = vpop.eup %143 }
 0x111   :  { %v83_v42 = vmul.f32 %v144_v41, %v78_v40  ;;  %v81_v43 = vpop.xlane.xlu1 %80  ;;  %vm88_vm9 = vweird.f32 %v144_v41 }
 0x112   :  { %145 = vrcp.f32 %v81_v43  ;;  %vm89_vm11 = vmor %vm87_vm10, %vm88_vm9  ;;  %v108_v56 = vand.u32 2147483648, %v81_v43  ;;  %v106_v58 = vand.u32 2147483647, %v81_v43  ;;  %vm102_vm14 = vweird.f32 %v81_v43 }
 0x113   :  { %v84_v44 = vsub.f32 1.0, %v83_v42 }
 0x114   :  { %v109_v60 = vor.u32 1.1754944e-38, %v108_v56  ;;  %vm107_vm1 = vcmp.eq.f32.partialorder %v106_v58, 8.507059e+37 }
 0x115   :  { %v85_v46 = vmul.f32 %v144_v41, %v84_v44 }
 0x117   :  { %v86_v48 = vadd.f32 %v144_v41, %v85_v46 }
 0x118   :  { %v146_v49 = vpop.eup %145 }
 0x119   :  { %v90_v51 = vsel %vm89_vm11, %v144_v41, %v86_v48  ;;  %v98_v52 = vmul.f32 %v146_v49, %v81_v43  ;;  %vm103_vm13 = vweird.f32 %v146_v49 }
 0x11a   :  { %v95_v53 = vsel %vm92_vm12, %v94_v50, %v90_v51  ;;  %vm104_vm15 = vmor %vm102_vm14, %vm103_vm13 }
 0x11b   :  { %v99_v54 = vsub.f32 1.0, %v98_v52  ;;  %v96_v55 = vmul.f32 %v95_v53, %v74_v28 }
 0x11d   :  { %v100_v57 = vmul.f32 %v146_v49, %v99_v54  ;;  %112 = vst.msk [vmem:[#allocation5] sm:$0xff] %vm29_vm0, %v96_v55 }
 0x11f   :  { %v101_v59 = vadd.f32 %v146_v49, %v100_v57 }
 0x121   :  { %v105_v61 = vsel %vm104_vm15, %v146_v49, %v101_v59 }
 0x122   :  { %v110_v62 = vsel %vm107_vm1, %v109_v60, %v105_v61 }
 0x123   :  { %v111_v63 = vmul.f32 %v110_v62, %v75_v38 }
 0x125   :  { %113 = vst.msk [vmem:[#allocation5 + $0x8] sm:$0xff] %vm29_vm0, %v111_v63 }
 0x126   :  { %126 = dma.vmem_to_hbm [thread:$0]  %s119_s13, 256, %s121_s16, [#allocation4], %s200_s11, %s200_s11, %s201_s12  }
 0x127   :  { %197 = dma.done.wait [#allocation4], 256  }
 0x128   :  { %198 = vsyncadd [#allocation4], 4294967040 }
 0x129   :  { %131 = vsyncpa [#allocation3], 1 }
 0x12a   :  { %132 = vsyncpa [#allocation4], 1 }

</bundles_post_ra>
